<compile_context>
chip_gen: v6e
topology: v6e:2x2x1
jax: 0.10.0
libtpu: 0.0.40
codegen_flags: <defaults>
</compile_context>

<pallas_src>
import functools

import jax
import jax.numpy as jnp
from jax.experimental import pallas as pl
from jax.experimental.pallas import tpu as pltpu


def _round_up(x, m):
    return -(-x // m) * m


def _head_kernel(x_ref, w1_ref, b1_ref, w2_ref, b2_ref, w3_ref, b3_ref,
                 logits_ref, probs_ref, acc_ref, *, spatial_size):
    """x_ref: (TB, C, TS) -- channels on sublanes, spatial on lanes.

    acc_ref: (TB, C) f32 pooled-sum accumulator, resident across the spatial
    (reduction) grid axis.  Outputs are written only on the final spatial step.
    """
    s_idx = pl.program_id(1)
    ns = pl.num_programs(1)
    ts = x_ref.shape[2]

    @pl.when(s_idx == 0)
    def _init():
        acc_ref[...] = jnp.zeros_like(acc_ref)

    x = x_ref[...]                                   # streamed dtype (f32/bf16)
    rem = spatial_size % ts                          # static Python int

    if rem != 0:
        # Only the boundary spatial tile contains padded lanes; gate the mask
        # there so interior tiles stay a plain lane reduce (1 op/elem, not 3).
        @pl.when(s_idx != ns - 1)
        def _plain():
            acc_ref[...] += jnp.sum(x, axis=-1, dtype=jnp.float32)

        @pl.when(s_idx == ns - 1)
        def _masked():
            lane = jax.lax.broadcasted_iota(jnp.int32, (1, 1, ts), 2)
            xm = jnp.where(lane < rem, x, jnp.zeros_like(x))
            acc_ref[...] += jnp.sum(xm, axis=-1, dtype=jnp.float32)
    else:
        acc_ref[...] += jnp.sum(x, axis=-1, dtype=jnp.float32)

    @pl.when(s_idx == ns - 1)
    def _finalize():
        pooled = acc_ref[...] * jnp.float32(1.0 / spatial_size)   # (TB, C)

        h = jnp.dot(pooled, w1_ref[...], preferred_element_type=jnp.float32)
        h = jnp.maximum(h + b1_ref[...], 0.0)
        h = jnp.dot(h, w2_ref[...], preferred_element_type=jnp.float32)
        h = jnp.maximum(h + b2_ref[...], 0.0)
        logits = jnp.dot(h, w3_ref[...], preferred_element_type=jnp.float32)
        logits = logits + b3_ref[...]                              # (TB, NCpad)

        logits_ref[...] = logits
        probs_ref[...] = jax.nn.sigmoid(logits)


def _pick_tiles(B, S, C, itemsize, batch_tile, spatial_tile,
                target_block_bytes=8 * 1024 * 1024):
    # Batch tile: keep >= 2 batch blocks whenever B > 1 so the "parallel"
    # grid axis can be sharded across v7x's 2 TensorCores.
    if batch_tile is not None:
        tb = batch_tile
    elif B == 1:
        tb = 1
    else:
        tb = min(8, -(-B // 2))
    tb = max(1, min(tb, B))

    # Spatial tile: full S if it fits the ~8 MiB block budget, otherwise the
    # largest multiple of 128 lanes under the budget (double-buffered this is
    # ~16 MiB -- comfortable in v7x's 64 MiB VMEM, and per-step overhead
    # (~0.35 us) stays a small fraction of each DMA).
    if spatial_tile is not None:
        ts = min(spatial_tile, S)
    elif tb * C * S * itemsize <= target_block_bytes:
        ts = S
    else:
        ts = target_block_bytes // (tb * C * itemsize)
    ts = max(1, min(ts, S))
    if ts < S:
        ts = max(128, (ts // 128) * 128)   # lane-aligned tiles when tiling
        if ts >= S:
            ts = S
    return tb, ts


def classification_head_forward(x_nchw, params, *, batch_tile=None,
                                spatial_tile=None):
    """x_nchw: (B, C, H, W) backbone features (f32 or bf16).

    Returns {"logits": (B, num_classes), "probs": (B, num_classes)} in f32.
    """
    B, C, H, W = x_nchw.shape
    S = H * W

    w1, b1, w2, b2, w3, b3 = (params[k] for k in
                              ("w1", "b1", "w2", "b2", "w3", "b3"))
    h1, h2, nc = w1.shape[1], w2.shape[1], w3.shape[1]

    # Pad the class dim to a lane multiple so output stores are lane-dense.
    nc_pad = _round_up(nc, 128)
    if nc_pad != nc:
        w3 = jnp.pad(w3, ((0, 0), (0, nc_pad - nc)))
        b3 = jnp.pad(b3, ((0, 0), (0, nc_pad - nc)))

    # (B, C, H, W) -> (B, C, H*W): contiguous reshape, no transpose, no extra
    # HBM pass.  Spatial -> lanes, channels -> sublanes.
    x = x_nchw.reshape(B, C, S)
    itemsize = x.dtype.itemsize

    tb, ts = _pick_tiles(B, S, C, itemsize, batch_tile, spatial_tile)
    nb, ns = pl.cdiv(B, tb), pl.cdiv(S, ts)

    weight_bytes = 4 * (C * h1 + h1 * h2 + h2 * nc_pad + h1 + h2 + nc_pad)
    est = (2 * tb * C * ts * itemsize                    # double-buffered x
           + 2 * weight_bytes                            # const blocks still 2x
           + 2 * 2 * tb * nc_pad * 4                     # logits + probs blocks
           + _round_up(tb, 8) * _round_up(C, 128) * 4)   # accumulator (padded)
    vmem_limit = int(min(max(2 * est, 16 * 1024 * 1024), 48 * 1024 * 1024))

    cost = pl.CostEstimate(
        flops=int(2 * B * (C * h1 + h1 * h2 + h2 * nc_pad) + B * S * C),
        transcendentals=int(B * nc_pad),
        bytes_accessed=int(B * S * C * itemsize + weight_bytes
                           + 2 * B * nc_pad * 4),
    )

    const_map = lambda b, s: (0, 0)
    out_map = lambda b, s: (b, 0, 0)
    kernel = functools.partial(_head_kernel, spatial_size=S)

    logits3, probs3 = pl.pallas_call(
        kernel,
        grid=(nb, ns),
        in_specs=[
            pl.BlockSpec((tb, C, ts), lambda b, s: (b, 0, s)),    # streamed
            pl.BlockSpec(w1.shape, const_map), pl.BlockSpec(b1.shape, const_map),
            pl.BlockSpec(w2.shape, const_map), pl.BlockSpec(b2.shape, const_map),
            pl.BlockSpec(w3.shape, const_map), pl.BlockSpec(b3.shape, const_map),
        ],
        out_specs=(
            pl.BlockSpec((None, tb, nc_pad), out_map),
            pl.BlockSpec((None, tb, nc_pad), out_map),
        ),
        out_shape=(
            jax.ShapeDtypeStruct((nb, tb, nc_pad), jnp.float32),
            jax.ShapeDtypeStruct((nb, tb, nc_pad), jnp.float32),
        ),
        scratch_shapes=[pltpu.VMEM((tb, C), jnp.float32)],
        compiler_params=pltpu.CompilerParams(
            dimension_semantics=("parallel", "arbitrary"),
            vmem_limit_bytes=vmem_limit),
        cost_estimate=cost,
    )(x, w1, b1, w2, b2, w3, b3)

    logits = logits3.reshape(nb * tb, nc_pad)[:B, :nc]
    probs = probs3.reshape(nb * tb, nc_pad)[:B, :nc]
    return {"logits": logits, "probs": probs}


def init_params(key, inp_features, hidden, num_classes):
    """Deterministic Kaiming-uniform-ish init matching the nn.Linear shapes."""
    dims = [inp_features] + list(hidden) + [num_classes]
    params = {}
    for i in range(len(dims) - 1):
        key, kw, kb = jax.random.split(key, 3)
        fan_in, fan_out = dims[i], dims[i + 1]
        bound = 1.0 / jnp.sqrt(fan_in)
        # stored transposed vs torch (in, out) so the kernel does pooled @ W
        params[f"w{i+1}"] = jax.random.uniform(
            kw, (fan_in, fan_out), jnp.float32, -bound, bound)
        params[f"b{i+1}"] = jax.random.uniform(
            kb, (1, fan_out), jnp.float32, -bound, bound)
    return params


def _reference(x_nchw, params):
    B, C, H, W = x_nchw.shape
    pooled = x_nchw.astype(jnp.float32).reshape(B, C, H * W).mean(-1)
    h = jnp.maximum(pooled @ params["w1"] + params["b1"], 0.0)
    h = jnp.maximum(h @ params["w2"] + params["b2"], 0.0)
    logits = h @ params["w3"] + params["b3"]
    return logits, jax.nn.sigmoid(logits)


if __name__ == "__main__":
    key = jax.random.PRNGKey(0)
    k_x, k_p, k_x2 = jax.random.split(key, 3)

    hidden = (64, 32)
    num_classes = 11

    # --- Case 1: B=2 -> tb=1, nb=2 (both v7x cores busy); single spatial tile.
    B, C, H, W = 2, 32, 16, 16
    x = jax.random.normal(k_x, (B, C, H, W), jnp.float32)
    params = init_params(k_p, C, hidden, num_classes)

    out = classification_head_forward(x, params)
    jax.block_until_ready(out)
    ref_logits, ref_probs = _reference(x, params)
    assert out["logits"].shape == (B, num_classes)
    assert jnp.allclose(out["logits"], ref_logits, atol=1e-4, rtol=1e-4)
    assert jnp.allclose(out["probs"], ref_probs, atol=1e-4, rtol=1e-4)

    # --- Case 2: spatial tiling with a masked remainder tile + ragged batch.
    B2, C2, H2, W2 = 3, 32, 20, 20            # S = 400 = 256 + 144 remainder
    x2 = jax.random.normal(k_x2, (B2, C2, H2, W2), jnp.float32)
    out2 = classification_head_forward(x2, params, batch_tile=2, spatial_tile=256)
    jax.block_until_ready(out2)
    ref2_logits, ref2_probs = _reference(x2, params)
    assert jnp.allclose(out2["logits"], ref2_logits, atol=1e-4, rtol=1e-4)
    assert jnp.allclose(out2["probs"], ref2_probs, atol=1e-4, rtol=1e-4)

    # --- Case 3: bf16 activations (as emitted by a bf16 backbone), f32 accum.
    x_bf = x.astype(jnp.bfloat16)
    out3 = classification_head_forward(x_bf, params)
    jax.block_until_ready(out3)
    ref3_logits, ref3_probs = _reference(x_bf, params)
    assert jnp.allclose(out3["logits"], ref3_logits, atol=2e-3, rtol=2e-3)
    assert jnp.allclose(out3["probs"], ref3_probs, atol=2e-3, rtol=2e-3)

    print("KERNEL_OK")
</pallas_src>

<mosaic_0001>
module attributes {stable_mosaic.version = 11 : i64} {
  func.func @_head_kernel(%arg0: i32, %arg1: i32, %arg2: memref<1x32x256xf32, #tpu.memory_space<vmem>>, %arg3: memref<32x64xf32, #tpu.memory_space<vmem>>, %arg4: memref<1x64xf32, #tpu.memory_space<vmem>>, %arg5: memref<64x32xf32, #tpu.memory_space<vmem>>, %arg6: memref<1x32xf32, #tpu.memory_space<vmem>>, %arg7: memref<32x128xf32, #tpu.memory_space<vmem>>, %arg8: memref<1x128xf32, #tpu.memory_space<vmem>>, %arg9: memref<1x1x128xf32, #tpu.memory_space<vmem>>, %arg10: memref<1x1x128xf32, #tpu.memory_space<vmem>>, %arg11: memref<1x32xf32, #tpu.memory_space<vmem>>) attributes {dimension_semantics = [#tpu.dimension_semantics<parallel>, #tpu.dimension_semantics<arbitrary>], iteration_bounds = array<i64: 2, 1>, scalar_prefetch = 0 : i64, scratch_operands = 1 : i64, tpu.core_type = #tpu.core_type<tc>, window_params = [{transform_indices = @transform_0, window_bounds = array<i64: 1, 32, 256>}, {pipeline_mode = #tpu.pipeline_mode<synchronous>, transform_indices = @transform_1, window_bounds = array<i64: 32, 64>}, {pipeline_mode = #tpu.pipeline_mode<synchronous>, transform_indices = @transform_2, window_bounds = array<i64: 1, 64>}, {pipeline_mode = #tpu.pipeline_mode<synchronous>, transform_indices = @transform_3, window_bounds = array<i64: 64, 32>}, {pipeline_mode = #tpu.pipeline_mode<synchronous>, transform_indices = @transform_4, window_bounds = array<i64: 1, 32>}, {pipeline_mode = #tpu.pipeline_mode<synchronous>, transform_indices = @transform_5, window_bounds = array<i64: 32, 128>}, {pipeline_mode = #tpu.pipeline_mode<synchronous>, transform_indices = @transform_6, window_bounds = array<i64: 1, 128>}, {transform_indices = @transform_7, window_bounds = array<i64: 1, 1, 128>}, {transform_indices = @transform_8, window_bounds = array<i64: 1, 1, 128>}]} {
    %c0_i32 = arith.constant 0 : i32
    %0 = arith.cmpi eq, %arg1, %c0_i32 : i32
    %1 = arith.extui %0 : i1 to i32
    %c0_i32_0 = arith.constant 0 : i32
    %2 = arith.cmpi ne, %1, %c0_i32_0 : i32
    scf.if %2 {
      %cst_9 = arith.constant 0.000000e+00 : f32
      %11 = vector.broadcast %cst_9 : f32 to vector<1x32xf32>
      %c0_10 = arith.constant 0 : index
      %c0_11 = arith.constant 0 : index
      %12 = vector.load %arg11[%c0_10, %c0_11] : memref<1x32xf32, #tpu.memory_space<vmem>>, vector<1x32xf32>
      tpu.vector_store %arg11[%c0_10, %c0_11], %11 {strides = array<i32>} : memref<1x32xf32, #tpu.memory_space<vmem>>, vector<1x32xf32>,
    } else {
    }
    %c0 = arith.constant 0 : index
    %c0_1 = arith.constant 0 : index
    %c0_2 = arith.constant 0 : index
    %3 = vector.load %arg2[%c0, %c0_1, %c0_2] : memref<1x32x256xf32, #tpu.memory_space<vmem>>, vector<1x32x256xf32>
    %c0_3 = arith.constant 0 : index
    %c0_4 = arith.constant 0 : index
    %4 = vector.load %arg11[%c0_3, %c0_4] : memref<1x32xf32, #tpu.memory_space<vmem>>, vector<1x32xf32>
    %cst = arith.constant dense<0.000000e+00> : vector<1x32xf32>
    %5 = vector.multi_reduction <add>, %3, %cst [2] : vector<1x32x256xf32> to vector<1x32xf32>
    %6 = arith.addf %4, %5 : vector<1x32xf32>
    %c0_5 = arith.constant 0 : index
    %c0_6 = arith.constant 0 : index
    %7 = vector.load %arg11[%c0_5, %c0_6] : memref<1x32xf32, #tpu.memory_space<vmem>>, vector<1x32xf32>
    tpu.vector_store %arg11[%c0_5, %c0_6], %6 {strides = array<i32>} : memref<1x32xf32, #tpu.memory_space<vmem>>, vector<1x32xf32>,
    %c0_i32_7 = arith.constant 0 : i32
    %8 = arith.cmpi eq, %arg1, %c0_i32_7 : i32
    %9 = arith.extui %8 : i1 to i32
    %c0_i32_8 = arith.constant 0 : i32
    %10 = arith.cmpi ne, %9, %c0_i32_8 : i32
    scf.if %10 {
      %c0_9 = arith.constant 0 : index
      %c0_10 = arith.constant 0 : index
      %11 = vector.load %arg11[%c0_9, %c0_10] : memref<1x32xf32, #tpu.memory_space<vmem>>, vector<1x32xf32>
      %cst_11 = arith.constant 3.906250e-03 : f32
      %12 = vector.broadcast %cst_11 : f32 to vector<1x32xf32>
      %13 = arith.mulf %11, %12 : vector<1x32xf32>
      %c0_12 = arith.constant 0 : index
      %c0_13 = arith.constant 0 : index
      %14 = vector.load %arg3[%c0_12, %c0_13] : memref<32x64xf32, #tpu.memory_space<vmem>>, vector<32x64xf32>
      %cst_14 = arith.constant dense<0.000000e+00> : vector<1x64xf32>
      %15 = tpu.matmul %13, %14, %cst_14 {dimension_numbers = #tpu.dot_dimension_numbers<[1], [0], [0], [1], [0, 0, 1, 1], [], []>} : vector<1x32xf32>, vector<32x64xf32>, vector<1x64xf32> -> vector<1x64xf32>
      %c0_15 = arith.constant 0 : index
      %c0_16 = arith.constant 0 : index
      %16 = vector.load %arg4[%c0_15, %c0_16] : memref<1x64xf32, #tpu.memory_space<vmem>>, vector<1x64xf32>
      %17 = arith.addf %15, %16 : vector<1x64xf32>
      %cst_17 = arith.constant 0.000000e+00 : f32
      %18 = vector.broadcast %cst_17 : f32 to vector<1x64xf32>
      %19 = arith.maximumf %17, %18 : vector<1x64xf32>
      %c0_18 = arith.constant 0 : index
      %c0_19 = arith.constant 0 : index
      %20 = vector.load %arg5[%c0_18, %c0_19] : memref<64x32xf32, #tpu.memory_space<vmem>>, vector<64x32xf32>
      %cst_20 = arith.constant dense<0.000000e+00> : vector<1x32xf32>
      %21 = tpu.matmul %19, %20, %cst_20 {dimension_numbers = #tpu.dot_dimension_numbers<[1], [0], [0], [1], [0, 0, 1, 1], [], []>} : vector<1x64xf32>, vector<64x32xf32>, vector<1x32xf32> -> vector<1x32xf32>
      %c0_21 = arith.constant 0 : index
      %c0_22 = arith.constant 0 : index
      %22 = vector.load %arg6[%c0_21, %c0_22] : memref<1x32xf32, #tpu.memory_space<vmem>>, vector<1x32xf32>
      %23 = arith.addf %21, %22 : vector<1x32xf32>
      %cst_23 = arith.constant 0.000000e+00 : f32
      %24 = vector.broadcast %cst_23 : f32 to vector<1x32xf32>
      %25 = arith.maximumf %23, %24 : vector<1x32xf32>
      %c0_24 = arith.constant 0 : index
      %c0_25 = arith.constant 0 : index
      %26 = vector.load %arg7[%c0_24, %c0_25] : memref<32x128xf32, #tpu.memory_space<vmem>>, vector<32x128xf32>
      %cst_26 = arith.constant dense<0.000000e+00> : vector<1x128xf32>
      %27 = tpu.matmul %25, %26, %cst_26 {dimension_numbers = #tpu.dot_dimension_numbers<[1], [0], [0], [1], [0, 0, 1, 1], [], []>} : vector<1x32xf32>, vector<32x128xf32>, vector<1x128xf32> -> vector<1x128xf32>
      %c0_27 = arith.constant 0 : index
      %c0_28 = arith.constant 0 : index
      %28 = vector.load %arg8[%c0_27, %c0_28] : memref<1x128xf32, #tpu.memory_space<vmem>>, vector<1x128xf32>
      %29 = arith.addf %27, %28 : vector<1x128xf32>
      %c0_29 = arith.constant 0 : index
      %c0_30 = arith.constant 0 : index
      %c0_31 = arith.constant 0 : index
      %30 = vector.load %arg9[%c0_29, %c0_30, %c0_31] : memref<1x1x128xf32, #tpu.memory_space<vmem>>, vector<1x1x128xf32>
      %31 = vector.shape_cast %30 : vector<1x1x128xf32> to vector<1x128xf32>
      %32 = vector.shape_cast %29 : vector<1x128xf32> to vector<1x1x128xf32>
      tpu.vector_store %arg9[%c0_29, %c0_30, %c0_31], %32 {strides = array<i32>} : memref<1x1x128xf32, #tpu.memory_space<vmem>>, vector<1x1x128xf32>,
      %33 = arith.negf %29 : vector<1x128xf32>
      %34 = math.exp %33 : vector<1x128xf32>
      %cst_32 = arith.constant 1.000000e+00 : f32
      %35 = vector.broadcast %cst_32 : f32 to vector<1x128xf32>
      %36 = arith.addf %35, %34 : vector<1x128xf32>
      %37 = arith.divf %35, %36 : vector<1x128xf32>
      %c0_33 = arith.constant 0 : index
      %c0_34 = arith.constant 0 : index
      %c0_35 = arith.constant 0 : index
      %38 = vector.load %arg10[%c0_33, %c0_34, %c0_35] : memref<1x1x128xf32, #tpu.memory_space<vmem>>, vector<1x1x128xf32>
      %39 = vector.shape_cast %38 : vector<1x1x128xf32> to vector<1x128xf32>
      %40 = vector.shape_cast %37 : vector<1x128xf32> to vector<1x1x128xf32>
      tpu.vector_store %arg10[%c0_33, %c0_34, %c0_35], %40 {strides = array<i32>} : memref<1x1x128xf32, #tpu.memory_space<vmem>>, vector<1x1x128xf32>,
    } else {
    }
    return
  }
  func.func @transform_0(%arg0: i32, %arg1: i32) -> (i32, i32, i32) {
    %c0_i32 = arith.constant 0 : i32
    %c0_i32_0 = arith.constant 0 : i32
    return %arg0, %c0_i32, %arg1 : i32, i32, i32
  }
  func.func @transform_1(%arg0: i32, %arg1: i32) -> (i32, i32) {
    %c0_i32 = arith.constant 0 : i32
    %c0_i32_0 = arith.constant 0 : i32
    %c0_i32_1 = arith.constant 0 : i32
    return %c0_i32, %c0_i32_0 : i32, i32
  }
  func.func @transform_2(%arg0: i32, %arg1: i32) -> (i32, i32) {
    %c0_i32 = arith.constant 0 : i32
    %c0_i32_0 = arith.constant 0 : i32
    %c0_i32_1 = arith.constant 0 : i32
    return %c0_i32, %c0_i32_0 : i32, i32
  }
  func.func @transform_3(%arg0: i32, %arg1: i32) -> (i32, i32) {
    %c0_i32 = arith.constant 0 : i32
    %c0_i32_0 = arith.constant 0 : i32
    %c0_i32_1 = arith.constant 0 : i32
    return %c0_i32, %c0_i32_0 : i32, i32
  }
  func.func @transform_4(%arg0: i32, %arg1: i32) -> (i32, i32) {
    %c0_i32 = arith.constant 0 : i32
    %c0_i32_0 = arith.constant 0 : i32
    %c0_i32_1 = arith.constant 0 : i32
    return %c0_i32, %c0_i32_0 : i32, i32
  }
  func.func @transform_5(%arg0: i32, %arg1: i32) -> (i32, i32) {
    %c0_i32 = arith.constant 0 : i32
    %c0_i32_0 = arith.constant 0 : i32
    %c0_i32_1 = arith.constant 0 : i32
    return %c0_i32, %c0_i32_0 : i32, i32
  }
  func.func @transform_6(%arg0: i32, %arg1: i32) -> (i32, i32) {
    %c0_i32 = arith.constant 0 : i32
    %c0_i32_0 = arith.constant 0 : i32
    %c0_i32_1 = arith.constant 0 : i32
    return %c0_i32, %c0_i32_0 : i32, i32
  }
  func.func @transform_7(%arg0: i32, %arg1: i32) -> (i32, i32, i32) {
    %c0_i32 = arith.constant 0 : i32
    %c0_i32_0 = arith.constant 0 : i32
    %c0_i32_1 = arith.constant 0 : i32
    return %arg0, %c0_i32, %c0_i32_0 : i32, i32, i32
  }
  func.func @transform_8(%arg0: i32, %arg1: i32) -> (i32, i32, i32) {
    %c0_i32 = arith.constant 0 : i32
    %c0_i32_0 = arith.constant 0 : i32
    %c0_i32_1 = arith.constant 0 : i32
    return %arg0, %c0_i32, %c0_i32_0 : i32, i32, i32
  }
}

</mosaic_0001>

<bundles_post_ra>
// kernel: tpu_custom_call.1
= control target key start
LH: loop header
LB: loop body
LE: loop exit
PB: predicated region body
PF: predicated region fallthrough
CT: control target
= control target key end

     0   :  { %14 = vsyncpa [#allocation4], 0  ;;  %s1852_s0 = inlined_call_operand.hbm [shape: f32[2,32,256], index: 0, kind: input, shape index: {}]   ;;  %s1853_s1 = inlined_call_operand.vmem [shape: f32[32,64], index: 1, kind: input, shape index: {}]   ;;  %s1854_s2 = inlined_call_operand.vmem [shape: f32[1,64], index: 2, kind: input, shape index: {}]   ;;  %s1855_s3 = inlined_call_operand.vmem [shape: f32[64,32], index: 3, kind: input, shape index: {}]   ;;  %s1856_s4 = inlined_call_operand.vmem [shape: f32[1,32], index: 4, kind: input, shape index: {}]   ;;  %s1857_s5 = inlined_call_operand.vmem [shape: f32[32,128], index: 5, kind: input, shape index: {}]   ;;  %s1858_s6 = inlined_call_operand.vmem [shape: f32[1,128], index: 6, kind: input, shape index: {}]   ;;  %s1859_s7 = inlined_call_operand.hbm [shape: f32[2,1,128], index: 7, kind: output, shape index: {0}]   ;;  %s1860_s8 = inlined_call_operand.hbm [shape: f32[2,1,128], index: 8, kind: output, shape index: {1}]  }
   0x1   :  { %16 = vsyncpa [#allocation4 + $0x1], 0 }
   0x2   :  { %17 = vsyncpa [#allocation5], 0 }
   0x3   :  { %19 = vsyncpa [#allocation5 + $0x1], 0 }
   0x4   :  { %20 = vsyncpa [#allocation8], 0 }
   0x5   :  { %22 = vsyncpa [#allocation8 + $0x1], 0  ;;  %s1503_s27 = smov 0   ;;  %s1505_s28 = smov 0  }
   0x6   :  { %s1507_s29 = smov 0   ;;  %s1509_s30 = smov 0  }
   0x7   :  { %s1511_s9 = smov 0   ;;  %s1513_s10 = smov 0  }
   0x8 LB: > { %1863 = sst [smem:[#allocation12_spill]] %s1443_s9  ;;  %s1152_s11 = sadd.s32 4294967295, %s1447_s10   ;;  %s1447_s10 = sphi %s1513_s10, %s28_s10   ;;  %s1443_s9 = sphi %s1511_s9, %s1872_s9   ;;  %s1439_s30 = sphi %s1509_s30, %s1871_s30   ;;  %s1435_s29 = sphi %s1507_s29, %s1875_s29   ;;  %s1431_s28 = sphi %s1505_s28, %s1874_s28   ;;  %s1427_s27 = sphi %s1503_s27, %s1873_s27  }
   0x9   : > { %s1153_s12 = sadd.s32 4294967294, %s1447_s10   ;;  %s40_s13 = sadd.s32 1, %s1443_s9 }
   0xa   : > { %s49_s14 = sadd.s32 1, %s1435_s29  ;;  %p42_p0 = scmp.ge.s32.totalorder %s40_s13, 2 }
   0xb   : > { %p56_p1 = scmp.ne.s32.totalorder %s1435_s29, %s1431_s28  ;;  %p57_p2 = scmp.eq.s32.totalorder %s1447_s10, 0 }
   0xc   : > { %p62_p3 = scmp.ne.s32.totalorder %s1431_s28, %s1427_s27  ;;  %s1877_s13 = smov (%p42_p0, %s40_s13), 0 }
   0xd   : > { %1864 = sst [smem:[#allocation13_spill]] %s1877_s13  ;;  %p1544_p4 = por %p57_p2, %p56_p1 }
   0xe   : > { %p63_p5 = scmp.eq.s32.totalorder %s1152_s11, 0  ;;  %s44_s16 = ssub.s32 %s1443_s9, %s1877_s13 }
   0xf   : > { %p212_p6 = scmp.eq.s32.totalorder %s1152_s11, 1  ;;  %p47_p7 = scmp.eq.s32.totalorder %s44_s16, 0 }
  0x10   : > { %p1550_p8 = por %p63_p5, %p62_p3  ;;  %p218_p10 = scmp.eq.s32.totalorder %s1153_s12, 1 }
  0x11   : > { %p1554_p9 = por %p212_p6, %p56_p1  ;;  %p1247_p13 = scmp.lt.s32.totalorder %s1447_s10, 2 }
  0x12   : > { %s1559_s19 = scalar_select %p47_p7, %s1435_s29, %s49_s14  }
  0x13   : > { %p1561_p11 = por %p218_p10, %p62_p3  ;;  %s282_s21 = sand.u32 1, %s1435_s29  }
  0x14   : > { %s1156_s22 = sshll.u32 %s282_s21, 6  ;;  %s1169_s23 = sshll.u32 %s1443_s9, 10 }
  0x15   : > { %s294_s26 = scalar_lea.hbm %s1852_s0, %s1169_s23  ;;  %s286_s11 = scalar_lea.vmem [#allocation3], %s1156_s22 }
  0x16   : > { %s295_s16 = sshll.u32 %s286_s11, 4  ;;  %p1574_p0 = pnand %p1247_p13, %p1544_p4  ;;  %s296_s16 = int_to_ptr.vmem [resolvable:$true] %s295_s16 }
  0x17   : > { %p1159_p1 = scmp.ge.s32.totalorder %s1447_s10, 1  ;;  %s283_s14 = scalar_lea.sflag [#allocation4], %s282_s21 }
  0x18   : > { %p1311_p2 = pneg %p1574_p0  ;;  %s1322_s13 = scalar_lea.vmem %s296_s16, 1024 }
  0x19   : > { %p1323_p3 = scmp.ne.s32.totalorder %s296_s16, %s1322_s13  ;;  %s1449_s9 = smov [#allocation3]  }
  0x1a   : > { %s1327_s24 = sshll.u32 %s1449_s9, 4  ;;  %s1328_s24 = int_to_ptr.vmem [resolvable:$false] %s1327_s24 }
  0x1b   : > { %p1325_p5 = pnand %p1323_p3, %p1311_p2  ;;  %s1329_s22 = scalar_lea.vmem %s1328_s24, 2048 }
  0x1c   : > { %p1330_p7 = scmp.lt.s32.totalorder %s296_s16, %s1328_s24  ;;  %p1331_p10 = scmp.lt.s32.totalorder %s1329_s22, %s1322_s13 }
  0x1d   : > { %p1326_p6 = pneg %p1325_p5 }
  0x1e   : > { %p1332_p12 = por %p1331_p10, %p1330_p7 }
  0x20   : > { %p1333_p4 = pnand %p1332_p12, %p1326_p6 }
  0x22   : > { %1336 = shalt.err (!%p1333_p4)
}
  0x23   : > { %s1450_s15 = smov 256   ;;  %s1451_s21 = smov 16  }
  0x24   : > { %1239 = dma.hbm_to_vmem [thread:$0]  (!%p1574_p0), %s294_s26, 1024, %s296_s16, %s283_s14, %s1450_s15, %s1450_s15, %s1451_s21  }
  0x25   : > { %p303_p13 = scmp.lt.s32.totalorder %s1447_s10, 3 }
  0x27   : > { %p304_p2 = pnand %p1159_p1, %p303_p13 }
  0x28   : > { %s1587_s9 = sand.u32 (!%p304_p2), 1, %s1431_s28  }
  0x29   : > { %307 = sbr.rel (%p304_p2) target bundleno = 1003 (0x3eb), region = 48  ;;  %s1160_s13 = sshll.u32 (!%p304_p2), %s1587_s9, 6 }
  0x2a   : > { %s310_s23 = scalar_lea.sflag (!%p304_p2), [#allocation4], %s1587_s9  ;;  %s313_s25 = scalar_lea.vmem (!%p304_p2), [#allocation3], %s1160_s13 }
  0x2e   : > { %1414 = dma.done.wait (%p1550_p8), %s310_s23, 1024  }
  0x2f   : > { %1416 = vsyncadd (%p1550_p8), %s310_s23, 4294966272  ;;  %v356_v0 = vld [vmem:[%s313_s25] sm:$0xff]  ;;  %v357_v1 = vld [vmem:[%s313_s25 + $0x8] sm:$0xff]  ;;  %v1452_v12 = vmov 0   ;;  %v381_v13 = vlaneseq  ;;  %v1453_v14 = vmov 1966171168  }
  0x30   : > { %v358_v2 = vld [vmem:[%s313_s25 + $0x10] sm:$0xff]  ;;  %v365_v3 = vadd.f32 %v357_v1, %v356_v0  ;;  %v359_v4 = vld [vmem:[%s313_s25 + $0x18] sm:$0xff]  ;;  %v360_v5 = vld [vmem:[%s313_s25 + $0x20] sm:$0xff]  ;;  %1303 = vset.pattern.permute.xlu0 %v1452_v12  ;;  %1304 = vset.pattern.permute.xlu1 %v1452_v12  ;;  %v514_v15 = vunpack.c.l.s4 %v1453_v14  ;;  %vm354_vm0 = vcmask 253952   ;;  %vm1455_vm1 = vmmov 0   ;;  %s342_s17 = scalar_lea.vmem [#allocation6], %s1587_s9 }
  0x31   : > { %v361_v6 = vld [vmem:[%s313_s25 + $0x28] sm:$0xff]  ;;  %v362_v8 = vld [vmem:[%s313_s25 + $0x30] sm:$0xff]  ;;  %v363_v9 = vld [vmem:[%s313_s25 + $0x38] sm:$0xff]  ;;  %v368_v10 = vadd.f32 %v359_v4, %v358_v2  ;;  %v1596_v16 = vshrl.u32 %v381_v13, 7  ;;  %vm728_vm2 = vcmask 130112   ;;  %vm735_vm3 = vcmask 195712  }
  0x32   : > { %v371_v7 = vadd.f32 %v361_v6, %v360_v5  ;;  %366 = vadd.xlane.f32.xlu0 %v365_v3  ;;  %v374_v11 = vadd.f32 %v363_v9, %v362_v8  ;;  %v515_v17 = vunpack.c.0.s8 %v514_v15  ;;  %vm742_vm4 = vcmask 261312   ;;  %s1165_s25 = sshll.u32 %s1439_s30, 4  ;;  %s1034_s26 = sshll.u32 %s342_s17, 4  ;;  %s1781_s26 = int_to_ptr.vmem [resolvable:$true] %s1034_s26 }
  0x33   : > { %v1599_v18 = vsub.s32 0, %v1596_v16  ;;  %v1602_v19 = vsub.s32 1, %v1596_v16  ;;  %v1605_v20 = vsub.s32 2, %v1596_v16  ;;  %v1608_v21 = vsub.s32 3, %v1596_v16  ;;  %s1779_s12 = scalar_lea.hbm %s1859_s7, %s1165_s25  ;;  %s1018_s14 = scalar_lea.sflag [#allocation5], %s1587_s9 }
  0x34   : > { %372 = vadd.xlane.f32.xlu1 %v371_v7  ;;  %v1611_v22 = vsub.s32 4, %v1596_v16  ;;  %v1614_v23 = vsub.s32 5, %v1596_v16  ;;  %v1617_v24 = vsub.s32 6, %v1596_v16  ;;  %v1620_v25 = vsub.s32 7, %v1596_v16  ;;  %s1337_s24 = scalar_lea.vmem %s1781_s26, 16  ;;  %s1456_s22 = smov [#allocation6]  }
  0x35   : > { %v1623_v27 = vsub.s32 %v515_v17, %v1596_v16  ;;  %vm772_vm5 = vcmask 261120   ;;  %vm856_vm6 = vcmask 523264   ;;  %p1338_p8 = scmp.ne.s32.totalorder %s1781_s26, %s1337_s24  ;;  %s1341_s15 = sshll.u32 %s1456_s22, 4  ;;  %s1342_s15 = int_to_ptr.vmem [resolvable:$false] %s1341_s15 }
  0x36   : > { %369 = vadd.xlane.f32.xlu0 %v368_v10  ;;  %s1343_s21 = scalar_lea.vmem %s1342_s15, 32  ;;  %p1344_p1 = scmp.lt.s32.totalorder %s1781_s26, %s1342_s15 }
  0x37   : > { %p1339_p12 = pnand %p1338_p8, %p1554_p9  ;;  %p1345_p3 = scmp.lt.s32.totalorder %s1343_s21, %s1337_s24 }
  0x38   : > { %375 = vadd.xlane.f32.xlu1 %v374_v11 }
  0x39   : > { %p1340_p0 = pneg %p1339_p12  ;;  %p1346_p5 = por %p1345_p3, %p1344_p1 }
  0x3b   : > { %p1347_p6 = pnand %p1346_p5, %p1340_p0 }
  0xbb   : > { %v367_v26 = vpop.xlane.xlu0 %366 }
  0xbc   : > { %v384_v29 = vrot.slane %v367_v26, %v1599_v18  ;;  %v388_v30 = vrot.slane %v367_v26, %v1602_v19  ;;  %v392_v31 = vrot.slane %v367_v26, %v1605_v20  ;;  %v396_v32 = vrot.slane %v367_v26, %v1608_v21 }
  0xbd   : > { %v373_v28 = vpop.xlane.xlu1 %372  ;;  %v400_v33 = vrot.slane %v367_v26, %v1611_v22  ;;  %v404_v34 = vrot.slane %v367_v26, %v1614_v23  ;;  %v408_v35 = vrot.slane %v367_v26, %v1617_v24  ;;  %v412_v36 = vrot.slane %v367_v26, %v1620_v25 }
  0xbe   : > { %v509_v37 = vcombine.low %v384_v29, %v388_v30  ;;  %v510_v38 = vcombine.low %v392_v31, %v396_v32  ;;  %v448_v39 = vrot.slane %v373_v28, %v1599_v18  ;;  %v452_v40 = vrot.slane %v373_v28, %v1602_v19 }
  0xbf   : > { %v370_v41 = vpop.xlane.xlu0 %369  ;;  %v511_v42 = vcombine.low %v400_v33, %v404_v34  ;;  %v512_v43 = vcombine.low %v408_v35, %v412_v36  ;;  %v456_v44 = vrot.slane %v373_v28, %v1605_v20  ;;  %v460_v45 = vrot.slane %v373_v28, %v1608_v21 }
  0xc0   : > { %v519_v46 = vrot.slane %v509_v37, %v1623_v27  ;;  %v526_v47 = vrot.slane %v510_v38, %v1623_v27  ;;  %v416_v48 = vrot.slane %v370_v41, %v1599_v18  ;;  %v420_v49 = vrot.slane %v370_v41, %v1602_v19 }
  0xc1   : > { %v533_v50 = vrot.slane %v511_v42, %v1623_v27  ;;  %v540_v51 = vrot.slane %v512_v43, %v1623_v27  ;;  %v424_v52 = vrot.slane %v370_v41, %v1605_v20  ;;  %v428_v53 = vrot.slane %v370_v41, %v1608_v21  ;;  %v376_v2 = vpop.xlane.xlu1 %375 }
  0xc2   : > { %v541_v54 = vcombine.low %v519_v46, %v526_v47  ;;  %v432_v55 = vrot.slane %v370_v41, %v1611_v22  ;;  %v436_v56 = vrot.slane %v370_v41, %v1614_v23  ;;  %v440_v57 = vrot.slane %v370_v41, %v1617_v24 }
  0xc3   : > { %v542_v58 = vcombine.low %v533_v50, %v540_v51  ;;  %v444_v59 = vrot.slane %v370_v41, %v1620_v25  ;;  %v558_v60 = vcombine.low %v416_v48, %v420_v49  ;;  %v559_v61 = vcombine.low %v424_v52, %v428_v53 }
  0xc4   : > { %v549_v62 = vrot.slane %v541_v54, %v1623_v27  ;;  %v560_v63 = vcombine.low %v432_v55, %v436_v56  ;;  %v464_v0 = vrot.slane %v373_v28, %v1611_v22  ;;  %v468_v1 = vrot.slane %v373_v28, %v1614_v23  ;;  %v770_v55 = vld [vmem:[%s1853_s1 + $0x18] sm:$0xff]  ;;  %v769_v56 = vld [vmem:[%s1853_s1 + $0x10] sm:$0xff] }
  0xc5   : > { %v556_v3 = vrot.slane %v542_v58, %v1623_v27  ;;  %v561_v4 = vcombine.low %v440_v57, %v444_v59  ;;  %v568_v5 = vrot.slane %v558_v60, %v1623_v27  ;;  %v575_v6 = vrot.slane %v559_v61, %v1623_v27  ;;  %v768_v57 = vld [vmem:[%s1853_s1 + $0x8] sm:$0xff]  ;;  %v767_v58 = vld [vmem:[%s1853_s1] sm:$0xff]  ;;  %v854_v59 = vld [vmem:[%s1855_s3 + $0x38] sm:$0xff] }
  0xc6   : > { %v582_v7 = vrot.slane %v560_v63, %v1623_v27  ;;  %v472_v8 = vrot.slane %v373_v28, %v1617_v24  ;;  %v476_v9 = vrot.slane %v373_v28, %v1620_v25  ;;  %v607_v10 = vcombine.low %v448_v39, %v452_v40  ;;  %v853_v60 = vld [vmem:[%s1855_s3 + $0x30] sm:$0xff]  ;;  %v852_v61 = vld [vmem:[%s1855_s3 + $0x28] sm:$0xff]  ;;  %v850_v63 = vld [vmem:[%s1855_s3 + $0x18] sm:$0xff] }
  0xc7   : > { %v557_v11 = vcombine.low %v549_v62, %v556_v3  ;;  %v589_v12 = vrot.slane %v561_v4, %v1623_v27  ;;  %v590_v14 = vcombine.low %v568_v5, %v575_v6  ;;  %v608_v15 = vcombine.low %v456_v44, %v460_v45  ;;  %v851_v62 = vld [vmem:[%s1855_s3 + $0x20] sm:$0xff] }
  0xc8   : > { %v609_v17 = vcombine.low %v464_v0, %v468_v1  ;;  %v610_v26 = vcombine.low %v472_v8, %v476_v9  ;;  %v617_v29 = vrot.slane %v607_v10, %v1623_v27  ;;  %v480_v30 = vrot.slane %v376_v2, %v1599_v18 }
  0xc9   : > { %706 = vperm.xlu0 %1303, %v557_v11   ;;  %v591_v31 = vcombine.low %v582_v7, %v589_v12  ;;  %v598_v32 = vrot.slane %v590_v14, %v1623_v27  ;;  %v624_v33 = vrot.slane %v608_v15, %v1623_v27  ;;  %v484_v28 = vrot.slane %v376_v2, %v1602_v19 }
  0xca   : > { %v631_v34 = vrot.slane %v609_v17, %v1623_v27  ;;  %v638_v35 = vrot.slane %v610_v26, %v1623_v27  ;;  %v488_v36 = vrot.slane %v376_v2, %v1605_v20  ;;  %v492_v37 = vrot.slane %v376_v2, %v1608_v21 }
  0xcb   : > { %v605_v38 = vrot.slane %v591_v31, %v1623_v27  ;;  %v639_v39 = vcombine.low %v617_v29, %v624_v33  ;;  %v496_v18 = vrot.slane %v376_v2, %v1611_v22  ;;  %v500_v40 = vrot.slane %v376_v2, %v1614_v23 }
  0xcc   : > { %v640_v41 = vcombine.low %v631_v34, %v638_v35  ;;  %v504_v42 = vrot.slane %v376_v2, %v1617_v24  ;;  %v508_v19 = vrot.slane %v376_v2, %v1620_v25  ;;  %v656_v43 = vcombine.low %v480_v30, %v484_v28  ;;  %v849_v34 = vld [vmem:[%s1855_s3 + $0x10] sm:$0xff]  ;;  %v847_v35 = vld [vmem:[%s1855_s3] sm:$0xff] }
  0xcd   : > { %v606_v44 = vcombine.low %v598_v32, %v605_v38  ;;  %v647_v45 = vrot.slane %v639_v39, %v1623_v27  ;;  %v657_v46 = vcombine.low %v488_v36, %v492_v37  ;;  %v658_v20 = vcombine.low %v496_v18, %v500_v40  ;;  %v934_v36 = vld [vmem:[%s1857_s5 + $0x18] sm:$0xff]  ;;  %v771_v37 = vld [vmem:[%s1854_s2] sm:$0x1] }
  0xce   : > { %v654_v21 = vrot.slane %v640_v41, %v1623_v27  ;;  %v659_v47 = vcombine.low %v504_v42, %v508_v19  ;;  %v666_v48 = vrot.slane %v656_v43, %v1623_v27  ;;  %v1454_v51 = vmov 0.0   ;;  %v933_v41 = vld [vmem:[%s1857_s5 + $0x10] sm:$0xff]  ;;  %v932_v42 = vld [vmem:[%s1857_s5 + $0x8] sm:$0xff]  ;;  %v931_v19 = vld [vmem:[%s1857_s5] sm:$0xff] }
  0xcf   : > { %709 = vperm.xlu1 %1304, %v606_v44   ;;  %v673_v22 = vrot.slane %v657_v46, %v1623_v27  ;;  %v680_v23 = vrot.slane %v658_v20, %v1623_v27  ;;  %355 = vst.msk [vmem:[#allocation2] sm:$0x1] %vm354_vm0, %v1454_v51  ;;  %1189 = vmatprep.subr.mxu0 %v1454_v51  ;;  %v718_v0 = vand.u32 127, %v381_v13  ;;  %v855_v43 = vld [vmem:[%s1856_s4] sm:$0x1] }
  0xd0   : > { %v655_v49 = vcombine.low %v647_v45, %v654_v21  ;;  %v687_v24 = vrot.slane %v659_v47, %v1623_v27  ;;  %1200 = vmatprep.subr.mxu1 %v1454_v51  ;;  %1190 = vmatpush3.msra.mxu0 %v770_v55  ;;  %v935_v21 = vld [vmem:[%s1858_s6] sm:$0x1] }
  0xd1   : > { %v688_v25 = vcombine.low %v666_v48, %v673_v22  ;;  %1197 = vmatprep.mubr.msk.f32.mxu0 %vm1455_vm1, %v1454_v51  ;;  %1191 = vmatprep.subr.mxu0 %v1454_v51  ;;  %v723_v1 = vadd.s32 4294967288, %v718_v0  ;;  %v730_v2 = vadd.s32 4294967280, %v718_v0  ;;  %v737_v5 = vadd.s32 4294967272, %v718_v0 }
  0xd2   : > { %v689_v50 = vcombine.low %v680_v23, %v687_v24  ;;  %1216 = vmatprep.mubr.msk.f32.mxu1 %vm1455_vm1, %v1454_v51  ;;  %1192 = vmatpush3.msra.mxu0 %v769_v56  ;;  %v721_v7 = vsub.s32 %v718_v0, %v1596_v16 }
  0xd3   : > { %712 = vperm.xlu1 %1304, %v655_v49   ;;  %v696_v52 = vrot.slane %v688_v25, %v1623_v27  ;;  %1193 = vmatprep.subr.mxu0 %v1454_v51  ;;  %v726_v4 = vsub.s32 %v723_v1, %v1596_v16  ;;  %v733_v6 = vsub.s32 %v730_v2, %v1596_v16 }
  0xd4   : > { %v703_v53 = vrot.slane %v689_v50, %v1623_v27  ;;  %1194 = vmatpush3.msra.mxu0 %v768_v57  ;;  %1201 = vmatpush3.msra.mxu1 %v854_v59  ;;  %v740_v11 = vsub.s32 %v737_v5, %v1596_v16 }
  0xd5   : > { %1195 = vmatprep.subr.mxu0 %v1454_v51  ;;  %1202 = vmatprep.subr.mxu1 %v1454_v51 }
  0xd6   : > { %v704_v54 = vcombine.low %v696_v52, %v703_v53  ;;  %1196 = vmatpush3.msra.mxu0 %v767_v58  ;;  %1203 = vmatpush3.msra.mxu1 %v853_v60  ;;  %v364_v31 = vld [vmem:[#allocation2] sm:$0x1] }
  0xd7   : > { %1219 = vmatprep.subr.mxu0 %v1454_v51  ;;  %1204 = vmatprep.subr.mxu1 %v1454_v51 }
  0xd8   : > { %715 = vperm.xlu1 %1304, %v704_v54   ;;  %1205 = vmatpush3.msra.mxu1 %v852_v61 }
  0xd9   : > { %1206 = vmatprep.subr.mxu1 %v1454_v51 }
  0xda   : > { %1207 = vmatpush3.msra.mxu1 %v851_v62 }
  0xdb   : > { %1208 = vmatprep.subr.mxu1 %v1454_v51 }
  0xdc   : > { %1209 = vmatpush3.msra.mxu1 %v850_v63 }
  0xdd   : > { %1210 = vmatprep.subr.mxu1 %v1454_v51 }
  0xde   : > { %1211 = vmatpush3.msra.mxu1 %v849_v34 }
  0xdf   : > { %1212 = vmatprep.subr.mxu1 %v1454_v51 }
 0x144   : > { %v707_v9 = vpop.permute.xlu0 %706 }
 0x145   : > { %v722_v14 = vrot.slane %v707_v9, %v721_v7 }
 0x14a   : > { %v710_v3 = vpop.permute.xlu1 %709 }
 0x14b   : > { %v727_v10 = vrot.slane %v710_v3, %v726_v4 }
 0x14d   : > { %v729_v15 = vsel %vm728_vm2, %v727_v10, %v722_v14 }
 0x14e   : > { %v713_v8 = vpop.permute.xlu1 %712 }
 0x14f   : > { %v734_v12 = vrot.slane %v713_v8, %v733_v6 }
 0x151   : > { %v736_v26 = vsel %vm735_vm3, %v734_v12, %v729_v15 }
 0x153   : > { %v716_v13 = vpop.permute.xlu1 %715 }
 0x154   : > { %v741_v17 = vrot.slane %v716_v13, %v740_v11 }
 0x156   : > { %v743_v29 = vsel %vm742_vm4, %v741_v17, %v736_v26 }
 0x157   : > { %v750_v30 = vrot.slane %v743_v29, %v1623_v27 }
 0x159   : > { %v757_v32 = vrot.slane %v750_v30, %v1623_v27  ;;  %v848_v27 = vld [vmem:[%s1855_s3 + $0x8] sm:$0xff] }
 0x15a   : > { %1213 = vmatpush3.msra.mxu1 %v848_v27 }
 0x15b   : > { %v759_v33 = vadd.f32 %v757_v32, %v364_v31  ;;  %1214 = vmatprep.subr.mxu1 %v1454_v51 }
 0x15c   : > { %1215 = vmatpush3.msra.mxu1 %v847_v35 }
 0x15d   : > { %761 = vst.msk [vmem:[#allocation2] sm:$0x1] %vm354_vm0, %v759_v33 }
 0x164   : > { %v765_v28 = vld [vmem:[#allocation2] sm:$0x1] }
 0x165   : > { %v766_v16 = vmul.f32 0.00390625, %v765_v28 }
 0x167   : > { %1198 = vmatmul.mubr.msk.f32.vlgmr.msra.gmra.mxu0 %vm772_vm5, %v766_v16 }
 0x168   : > { %1227 = vmatprep.mubr.msk.f32.mxu0 %vm1455_vm1, %v1454_v51  ;;  %1220 = vmatpush3.msra.mxu0 %v934_v36 }
 0x169   : > { %1221 = vmatprep.subr.mxu0 %v1454_v51 }
 0x16a   : > { %1222 = vmatpush3.msra.mxu0 %v933_v41 }
 0x16b   : > { %1223 = vmatprep.subr.mxu0 %v1454_v51 }
 0x16c   : > { %1224 = vmatpush3.msra.mxu0 %v932_v42 }
 0x16d   : > { %1225 = vmatprep.subr.mxu0 %v1454_v51 }
 0x16e   : > { %1226 = vmatpush3.msra.mxu0 %v931_v19 }
 0x227   : > { %v842_v38 = vpop.f32.mrf.mxu0 }
 0x228   : > { %v843_v39 = vadd.f32 %v842_v38, %v771_v37 }
 0x229   : > { %v1199_v18 = vpop.f32.mrf.mxu0 }
 0x22a   : > { %v846_v40 = vmax.f32 %v843_v39, 0.0 }
 0x22c   : > { %1217 = vmatmul.mubr.msk.f32.vlgmr.msra.gmra.mxu1 %vm856_vm6, %v846_v40 }
 0x2ec   : > { %v926_v44 = vpop.f32.mrf.mxu1 }
 0x2ed   : > { %v927_v45 = vadd.f32 %v926_v44, %v855_v43 }
 0x2ee   : > { %v1218_v46 = vpop.f32.mrf.mxu1 }
 0x2ef   : > { %v930_v20 = vmax.f32 %v927_v45, 0.0 }
 0x2f1   : > { %1228 = vmatmul.mubr.msk.f32.vlgmr.msra.gmra.mxu0 %vm772_vm5, %v930_v20 }
 0x3b1   : > { %v1005_v47 = vpop.f32.mrf.mxu0 }
 0x3b2   : > { %v1006_v48 = vadd.f32 %v1005_v47, %v935_v21 }
 0x3b3   : > { %v1229_v22 = vpop.f32.mrf.mxu0 }
 0x3b4   : > { %1009 = vst [vmem:[%s342_s17] sm:$0x1] %v1006_v48  ;;  %v1164_v23 = vmul.f32 -1.442695, %v1006_v48 }
 0x3b5   : > { %1350 = shalt.err (!%p1347_p6)
}
 0x3b6   : > { %s1351_s13 = scalar_lea.hbm %s1779_s12, 16  ;;  %s1355_s11 = scalar_lea.hbm %s1859_s7, 32 }
 0x3b7   : > { %p1352_p7 = scmp.ne.s32.totalorder %s1779_s12, %s1351_s13  ;;  %p1356_p13 = scmp.lt.s32.totalorder %s1779_s12, %s1859_s7 }
 0x3b8   : > { %p1357_p2 = scmp.lt.s32.totalorder %s1355_s11, %s1351_s13 }
 0x3b9   : > { %p1353_p10 = pnand %p1352_p7, %p1554_p9 }
 0x3ba   : > { %p1358_p8 = por %p1357_p2, %p1356_p13 }
 0x3bb   : > { %p1354_p4 = pneg %p1353_p10 }
 0x3bd   : > { %p1359_p12 = pnand %p1358_p8, %p1354_p4 }
 0x3bf   : > { %1362 = shalt.err (!%p1359_p12)
}
 0x3c0   : > { %1232 = dma.vmem_to_hbm [thread:$0]  (%p1554_p9), %s1781_s26, 16, %s1779_s12, %s1018_s14   ;;  %1305 = vpow2.f32 %v1164_v23 }
 0x3c1   : > { %s348_s24 = scalar_lea.vmem [#allocation7], %s1587_s9  ;;  %s1810_s23 = scalar_lea.hbm %s1860_s8, %s1165_s25 }
 0x3c2   : > { %s1047_s15 = sshll.u32 %s348_s24, 4  ;;  %s1022_s17 = scalar_lea.sflag [#allocation8], %s1587_s9  ;;  %s1048_s15 = int_to_ptr.vmem [resolvable:$true] %s1047_s15 }
 0x3c3   : > { %s1363_s11 = scalar_lea.vmem %s1048_s15, 16  ;;  %s1457_s26 = smov [#allocation7]  }
 0x3c4   : > { %p1364_p0 = scmp.ne.s32.totalorder %s1048_s15, %s1363_s11  ;;  %s1367_s12 = sshll.u32 %s1457_s26, 4  ;;  %s1368_s12 = int_to_ptr.vmem [resolvable:$false] %s1367_s12 }
 0x3c5   : > { %s1369_s14 = scalar_lea.vmem %s1368_s12, 32  ;;  %p1370_p5 = scmp.lt.s32.totalorder %s1048_s15, %s1368_s12 }
 0x3c6   : > { %p1365_p1 = pnand %p1364_p0, %p1554_p9  ;;  %p1371_p6 = scmp.lt.s32.totalorder %s1369_s14, %s1363_s11 }
 0x3c8   : > { %p1366_p3 = pneg %p1365_p1  ;;  %p1372_p7 = por %p1371_p6, %p1370_p5 }
 0x3ca   : > { %p1373_p10 = pnand %p1372_p7, %p1366_p3 }
 0x3cd   : > { %v1306_v49 = vpop.eup %1305 }
 0x3ce   : > { %v1013_v24 = vadd.f32 1.0, %v1306_v49 }
 0x3d0   : > { %1307 = vrcp.f32 %v1013_v24 }
 0x3dd   : > { %v1308_v25 = vpop.eup %1307 }
 0x3de   : > { %1016 = vst [vmem:[%s348_s24] sm:$0x1] %v1308_v25 }
 0x3df   : > { %1376 = shalt.err (!%p1373_p10)
}
 0x3e0   : > { %s1377_s30 = scalar_lea.hbm %s1810_s23, 16  ;;  %s1381_s16 = scalar_lea.hbm %s1860_s8, 32 }
 0x3e1   : > { %p1378_p4 = scmp.ne.s32.totalorder %s1810_s23, %s1377_s30  ;;  %p1382_p8 = scmp.lt.s32.totalorder %s1810_s23, %s1860_s8 }
 0x3e2   : > { %p1383_p12 = scmp.lt.s32.totalorder %s1381_s16, %s1377_s30 }
 0x3e3   : > { %p1379_p13 = pnand %p1378_p4, %p1554_p9 }
 0x3e4   : > { %p1384_p0 = por %p1383_p12, %p1382_p8 }
 0x3e5   : > { %p1380_p2 = pneg %p1379_p13 }
 0x3e7   : > { %p1385_p1 = pnand %p1384_p0, %p1380_p2 }
 0x3e9   : > { %1388 = shalt.err (!%p1385_p1)
}
 0x3ea   : > { %1233 = dma.vmem_to_hbm [thread:$0]  (%p1554_p9), %s1048_s15, 16, %s1810_s23, %s1022_s17  }
 0x3eb PF: > { %s1059_s21 = sand.u32 1, %s1427_s27   ;;  %p1870_p3 = scmp.ge.s32.totalorder %s1447_s10, 2 }
 0x3ec   : > { %s1060_s13 = scalar_lea.sflag [#allocation5], %s1059_s21 }
 0x3ed   : > { %p1241_p5 = pnand %p1870_p3, %p1561_p11 }
 0x3ef   : > { %p1242_p6 = pneg %p1241_p5 }
 0x3f1   : > { %1418 = dma.done.wait (%p1242_p6), %s1060_s13, 16  }
 0x3f2   : > { %1420 = vsyncadd (%p1242_p6), %s1060_s13, 4294967280  ;;  %s1068_s11 = scalar_lea.sflag [#allocation8], %s1059_s21 }
 0x3f3   : > { %1422 = dma.done.wait (%p1242_p6), %s1068_s11, 16  }
 0x3f4   : > { %1424 = vsyncadd (%p1242_p6), %s1068_s11, 4294967280  ;;  %s28_s10 = sadd.s32 1, %s1447_s10   ;;  %s1871_s30 = sld [smem:[#allocation12_spill]] }
 0x3f5   : > { %p25_p7 = scmp.ge.s32.totalorder %s28_s10, 4   ;;  %s1872_s9 = sld [smem:[#allocation13_spill]] }
 0x3f6   : > { %s1873_s27 = smov %s1431_s28  ;;  %s1874_s28 = smov %s1435_s29 }
 0x3f7   : > { %s1875_s29 = smov %s1559_s19  ;;  %27 = sbr.rel (!%p25_p7) target bundleno = 8 (0x8), region = 118 }
 0x3fc   :  { %1072 = vsyncpa [#allocation4], 1 }
 0x3fd   :  { %1074 = vsyncpa [#allocation4 + $0x1], 1 }
 0x3fe   :  { %1075 = vsyncpa [#allocation5], 1 }
 0x3ff   :  { %1077 = vsyncpa [#allocation5 + $0x1], 1 }
 0x400   :  { %1078 = vsyncpa [#allocation8], 1 }
 0x401   :  { %1080 = vsyncpa [#allocation8 + $0x1], 1 }

</bundles_post_ra>
